<compile_context>
chip_gen: v7x
topology: tpu7x:2x2x1
jax: 0.10.0
libtpu: 0.0.40
codegen_flags: <defaults>
</compile_context>

<pallas_src>
import functools

import jax
import jax.numpy as jnp
import numpy as np
from jax.experimental import pallas as pl
from jax.experimental.pallas import tpu as pltpu


# ----------------------------------------------------------------------------
# Pallas kernel: GatedCNN  ->  conv2(x) * sigmoid(conv1(x)),  same padding, no bias
# ----------------------------------------------------------------------------
def _gated_cnn_kernel(x_ref, w_ref, o_ref, *, kernel_size, seq_len):
    # x_ref: (TILE_N, H) f32   row tile (whole sequences: TILE_N % seq_len == 0)
    # w_ref: (K*H, 2H)   bf16  fused [gate | value] conv weights (VMEM-resident)
    # o_ref: (TILE_N, H) f32
    x = x_ref[...]
    tile_n, H = x.shape
    pad = (kernel_size - 1) // 2

    # Position of every row inside its own sequence.  Tiles are sequence
    # aligned (tile start is a multiple of seq_len), so the local row index
    # mod seq_len equals the global position in the sequence.
    pos = jax.lax.broadcasted_iota(jnp.int32, (tile_n, H), 0) % seq_len

    windows = []
    for j in range(kernel_size):                       # static, fully unrolled
        off = j - pad                                  # source-row offset of tap j
        if off == 0:
            shifted = x
        else:
            # shifted[r] = x[(r + off) % tile_n]  (XLU sublane rotate, off the
            # VALU/MXU critical path).  Requires |off| < tile_n (always true
            # for any real shape: tile_n >= S >= K > pad).
            shifted = pltpu.roll(x, shift=(-off) % tile_n, axis=0)
        # Zero rows whose source index falls outside the current sequence:
        # this realizes the zero "same" padding AND kills the circular
        # wrap-around of the roll (across sequences inside the tile and
        # across the tile edge), so no halo is needed.
        src = pos + off
        valid = (src >= 0) & (src < seq_len)
        masked = jnp.where(valid, shifted, 0.0)
        # Per-window bf16 cast: builds the bf16 slab directly, no f32
        # (TILE_N, K*H) staging pass.
        windows.append(masked.astype(jnp.bfloat16))

    # (TILE_N, K*H) bf16: all taps side by side -> one wide MXU contraction
    xs = jnp.concatenate(windows, axis=-1)
    # One matmul for both convolutions and all K taps, f32 accumulation.
    y = jnp.dot(xs, w_ref[...], preferred_element_type=jnp.float32)   # (TILE_N, 2H)
    gate = y[:, :H]          # cnn1
    value = y[:, H:]         # cnn2
    o_ref[...] = value * jax.nn.sigmoid(gate)          # gating kept in f32


def _vmem_limit_bytes(tile_n, H, K):
    # Conservative per-call live-set estimate (double-buffered I/O tiles +
    # resident weight block + bf16 slab + f32 y + transient f32 windows),
    # clamped to [32 MiB scoped default, 64 MiB v7x physical].
    x_tile = tile_n * H * 4
    out_tile = tile_n * H * 4
    w_blk = (K * H) * (2 * H) * 2
    slab = tile_n * (K * H) * 2
    y_f32 = tile_n * (2 * H) * 4
    scratch = K * tile_n * H * 4
    est = 2 * (x_tile + out_tile + w_blk) + slab + y_f32 + scratch
    return int(max(32 * 1024 * 1024, min(2 * est, 64 * 1024 * 1024)))


def gated_cnn_pallas(x, w1, w2, *, target_tile_rows=1024):
    """x: [B, S, H] float32.  w1/w2: torch Conv1d weights [H_out, H_in, K] (bias=False).

    target_tile_rows: desired rows per grid step; rounded down to a whole
    number of sequences that divides B.  ~1024 is safe on v7x (64 MiB VMEM);
    2048-4096 is better on v5e/v6e.   # TODO(synk): pick per-generation via get_tpu_info.
    """
    B, S, H = x.shape
    K = w1.shape[-1]
    if K % 2 == 0:
        raise ValueError("even kernel_size has asymmetric torch 'same' padding; only odd K supported")
    N = B * S

    # Sequence-aligned row tile: TILE_N is a multiple of S and divides N.
    seqs_per_tile = max(1, min(B, target_tile_rows // S))
    while B % seqs_per_tile:
        seqs_per_tile -= 1
    tile_n = seqs_per_tile * S
    grid = (N // tile_n,)

    # Fuse gate+value weights: [K, H_in, H_out_gate | H_out_value] -> (K*H, 2H), bf16 for the MXU.
    w1t = jnp.transpose(w1, (2, 1, 0))                 # (K, H_in, H_out)
    w2t = jnp.transpose(w2, (2, 1, 0))
    w_cat = jnp.concatenate([w1t, w2t], axis=-1).reshape(K * H, 2 * H).astype(jnp.bfloat16)

    x_flat = x.reshape(N, H).astype(jnp.float32)

    cost = pl.CostEstimate(
        flops=2 * N * (K * H) * (2 * H) + 4 * N * H,
        transcendentals=N * H,
        bytes_accessed=2 * (4 * N * H) + 2 * (K * H) * (2 * H),
    )

    out = pl.pallas_call(
        functools.partial(_gated_cnn_kernel, kernel_size=K, seq_len=S),
        out_shape=jax.ShapeDtypeStruct((N, H), jnp.float32),
        grid=grid,
        in_specs=[
            pl.BlockSpec((tile_n, H), lambda i: (i, 0)),        # activation row tile
            pl.BlockSpec((K * H, 2 * H), lambda i: (0, 0)),     # fused weights: resident across steps
        ],
        out_specs=pl.BlockSpec((tile_n, H), lambda i: (i, 0)),
        compiler_params=pltpu.CompilerParams(
            dimension_semantics=("parallel",),                   # v7x dual-TC sharding; no-op on v5e/v6e
            vmem_limit_bytes=_vmem_limit_bytes(tile_n, H, K),
        ),
        cost_estimate=cost,
    )(x_flat, w_cat)
    return out.reshape(B, S, H)


# ----------------------------------------------------------------------------
# Plain-JAX reference for the GatedCNN (correctness check against the kernel)
# ----------------------------------------------------------------------------
def gated_cnn_ref(x, w1, w2):
    pad = (w1.shape[-1] - 1) // 2

    def conv(x_bsh, w):
        xl = jnp.transpose(x_bsh, (0, 2, 1))                        # NCL
        y = jax.lax.conv_general_dilated(
            xl, w, window_strides=(1,), padding=[(pad, pad)],
            dimension_numbers=("NCH", "OIH", "NCH"),
            precision=jax.lax.Precision.HIGHEST)
        return jnp.transpose(y, (0, 2, 1))                          # back to [B,S,H]

    return conv(x, w2) * jax.nn.sigmoid(conv(x, w1))


# ----------------------------------------------------------------------------
# Deterministic tiny BERT stand-in (plain JAX glue).
# TODO(synk): BertModel.from_pretrained(...) loads a checkpoint from disk; this
# is replaced by a randomly-initialized single-layer BERT-style encoder.
# ----------------------------------------------------------------------------
def _layer_norm(x, g, b, eps=1e-12):
    mu = jnp.mean(x, axis=-1, keepdims=True)
    var = jnp.mean((x - mu) ** 2, axis=-1, keepdims=True)
    return (x - mu) * jax.lax.rsqrt(var + eps) * g + b


def make_bert_params(key, vocab, max_pos, hidden, num_heads, intermediate):
    ks = jax.random.split(key, 10)
    s = 0.02
    return {
        "tok_emb": s * jax.random.normal(ks[0], (vocab, hidden), jnp.float32),
        "pos_emb": s * jax.random.normal(ks[1], (max_pos, hidden), jnp.float32),
        "wq": s * jax.random.normal(ks[2], (hidden, hidden), jnp.float32),
        "wk": s * jax.random.normal(ks[3], (hidden, hidden), jnp.float32),
        "wv": s * jax.random.normal(ks[4], (hidden, hidden), jnp.float32),
        "wo": s * jax.random.normal(ks[5], (hidden, hidden), jnp.float32),
        "w_ff1": s * jax.random.normal(ks[6], (hidden, intermediate), jnp.float32),
        "w_ff2": s * jax.random.normal(ks[7], (intermediate, hidden), jnp.float32),
        "ln0_g": jnp.ones((hidden,)), "ln0_b": jnp.zeros((hidden,)),
        "ln1_g": jnp.ones((hidden,)), "ln1_b": jnp.zeros((hidden,)),
        "ln2_g": jnp.ones((hidden,)), "ln2_b": jnp.zeros((hidden,)),
        "num_heads": num_heads,
    }


def tiny_bert(params, token_ids):
    B, S = token_ids.shape
    h = params["tok_emb"][token_ids] + params["pos_emb"][None, :S, :]
    h = _layer_norm(h, params["ln0_g"], params["ln0_b"])
    nh = params["num_heads"]
    H = h.shape[-1]
    hd = H // nh
    q = h @ params["wq"]
    k = h @ params["wk"]
    v = h @ params["wv"]

    def split(t):
        return t.reshape(B, S, nh, hd).transpose(0, 2, 1, 3)

    qh, kh, vh = split(q), split(k), split(v)
    att = jax.nn.softmax(
        jnp.einsum("bhqd,bhkd->bhqk", qh, kh) / jnp.sqrt(float(hd)), axis=-1)
    ctx = jnp.einsum("bhqk,bhkd->bhqd", att, vh).transpose(0, 2, 1, 3).reshape(B, S, H)
    h = _layer_norm(h + ctx @ params["wo"], params["ln1_g"], params["ln1_b"])
    ff = jax.nn.gelu(h @ params["w_ff1"]) @ params["w_ff2"]
    h = _layer_norm(h + ff, params["ln2_g"], params["ln2_b"])
    return h  # bert(x)[0] : last hidden states [B, S, H]


# ----------------------------------------------------------------------------
# BertGCNN forward:  x -> bert(x)[0] -> GatedCNN (Pallas)
# ----------------------------------------------------------------------------
def bert_gcnn_forward(bert_params, w_cnn1, w_cnn2, token_ids, *, target_tile_rows=1024):
    h = tiny_bert(bert_params, token_ids)                                   # [B, S, H]
    return gated_cnn_pallas(h, w_cnn1, w_cnn2, target_tile_rows=target_tile_rows)


if __name__ == "__main__":
    # small, module-consistent shapes
    B, S = 2, 8
    hidden_size = 32
    kernel_size = 3
    vocab = 30
    num_heads = 4
    intermediate = 64

    key = jax.random.PRNGKey(0)
    k_bert, k_w1, k_w2, k_ids = jax.random.split(key, 4)

    bert_params = make_bert_params(k_bert, vocab, 64, hidden_size, num_heads, intermediate)
    # nn.Conv1d(hidden, hidden, kernel_size, bias=False) weight: [out, in, K]
    w_cnn1 = 0.1 * jax.random.normal(k_w1, (hidden_size, hidden_size, kernel_size), jnp.float32)
    w_cnn2 = 0.1 * jax.random.normal(k_w2, (hidden_size, hidden_size, kernel_size), jnp.float32)

    token_ids = jax.random.randint(k_ids, (B, S), 0, vocab, dtype=jnp.int32)

    # target_tile_rows=S so the demo actually exercises a multi-step grid
    # (grid=(B,)) with the weight block held resident across steps.
    out = bert_gcnn_forward(bert_params, w_cnn1, w_cnn2, token_ids, target_tile_rows=S)
    out = jax.block_until_ready(out)

    # Correctness check of the Pallas GatedCNN.  The kernel quantizes the
    # matmul inputs to bf16 (f32 accumulation), so feed the reference the same
    # bf16-rounded values; remaining difference is accumulation order only.
    h = tiny_bert(bert_params, token_ids)
    hq = h.astype(jnp.bfloat16).astype(jnp.float32)
    w1q = w_cnn1.astype(jnp.bfloat16).astype(jnp.float32)
    w2q = w_cnn2.astype(jnp.bfloat16).astype(jnp.float32)
    ref = gated_cnn_ref(hq, w1q, w2q)
    np.testing.assert_allclose(np.asarray(out), np.asarray(ref), atol=1e-3, rtol=1e-3)

    print("KERNEL_OK")
</pallas_src>

<mosaic_0001>
module attributes {stable_mosaic.version = 11 : i64} {
  func.func @_gated_cnn_kernel(%arg0: i32, %arg1: memref<8x32xf32, #tpu.memory_space<vmem>>, %arg2: memref<96x64xbf16, #tpu.memory_space<vmem>>, %arg3: memref<8x32xf32, #tpu.memory_space<vmem>>) attributes {dimension_semantics = [#tpu.dimension_semantics<parallel>], iteration_bounds = array<i64: 2>, scalar_prefetch = 0 : i64, scratch_operands = 0 : i64, tpu.core_type = #tpu.core_type<tc>, window_params = [{transform_indices = @transform_0, window_bounds = array<i64: 8, 32>}, {pipeline_mode = #tpu.pipeline_mode<synchronous>, transform_indices = @transform_1, window_bounds = array<i64: 96, 64>}, {transform_indices = @transform_2, window_bounds = array<i64: 8, 32>}]} {
    %c0 = arith.constant 0 : index
    %c0_0 = arith.constant 0 : index
    %0 = vector.load %arg1[%c0, %c0_0] : memref<8x32xf32, #tpu.memory_space<vmem>>, vector<8x32xf32>
    %1 = tpu.iota {dimensions = array<i32: 0>} : vector<8x32xi32>
    %c8_i32 = arith.constant 8 : i32
    %c0_i32 = arith.constant 0 : i32
    %2 = arith.cmpi eq, %c8_i32, %c0_i32 : i32
    %c1_i32 = arith.constant 1 : i32
    %3 = arith.select %2, %c1_i32, %c8_i32 : i32
    %4 = vector.broadcast %3 : i32 to vector<8x32xi32>
    %5 = arith.remsi %1, %4 : vector<8x32xi32>
    %c0_i32_1 = arith.constant 0 : i32
    %6 = vector.broadcast %c0_i32_1 : i32 to vector<8x32xi32>
    %7 = arith.cmpi ne, %5, %6 : vector<8x32xi32>
    %c0_i32_2 = arith.constant 0 : i32
    %8 = vector.broadcast %c0_i32_2 : i32 to vector<8x32xi32>
    %9 = arith.cmpi slt, %5, %8 : vector<8x32xi32>
    %c0_i32_3 = arith.constant 0 : i32
    %10 = arith.cmpi slt, %3, %c0_i32_3 : i32
    %11 = vector.broadcast %10 : i1 to vector<8x32xi1>
    %12 = vector.broadcast %11 : vector<8x32xi1> to vector<8x32xi1>
    %13 = arith.xori %9, %12 : vector<8x32xi1>
    %14 = arith.andi %13, %7 : vector<8x32xi1>
    %15 = vector.broadcast %3 : i32 to vector<8x32xi32>
    %16 = arith.addi %5, %15 : vector<8x32xi32>
    %17 = arith.select %14, %16, %5 : vector<8x32xi1>, vector<8x32xi32>
    %c1_i32_4 = arith.constant 1 : i32
    %18 = tpu.dynamic_rotate %0 by %c1_i32_4 dim 0 : vector<8x32xf32>, i32 -> vector<8x32xf32>
    %c-1_i32 = arith.constant -1 : i32
    %19 = vector.broadcast %c-1_i32 : i32 to vector<8x32xi32>
    %20 = arith.addi %17, %19 : vector<8x32xi32>
    %c0_i32_5 = arith.constant 0 : i32
    %21 = vector.broadcast %c0_i32_5 : i32 to vector<8x32xi32>
    %22 = arith.cmpi sge, %20, %21 : vector<8x32xi32>
    %c8_i32_6 = arith.constant 8 : i32
    %23 = vector.broadcast %c8_i32_6 : i32 to vector<8x32xi32>
    %24 = arith.cmpi slt, %20, %23 : vector<8x32xi32>
    %25 = arith.andi %22, %24 : vector<8x32xi1>
    %cst = arith.constant 0.000000e+00 : f32
    %26 = vector.broadcast %cst : f32 to vector<8x32xf32>
    %27 = arith.select %25, %18, %26 : vector<8x32xi1>, vector<8x32xf32>
    %28 = arith.truncf %27 : vector<8x32xf32> to vector<8x32xbf16>
    %c0_i32_7 = arith.constant 0 : i32
    %29 = vector.broadcast %c0_i32_7 : i32 to vector<8x32xi32>
    %30 = arith.addi %17, %29 : vector<8x32xi32>
    %c0_i32_8 = arith.constant 0 : i32
    %31 = vector.broadcast %c0_i32_8 : i32 to vector<8x32xi32>
    %32 = arith.cmpi sge, %30, %31 : vector<8x32xi32>
    %c8_i32_9 = arith.constant 8 : i32
    %33 = vector.broadcast %c8_i32_9 : i32 to vector<8x32xi32>
    %34 = arith.cmpi slt, %30, %33 : vector<8x32xi32>
    %35 = arith.andi %32, %34 : vector<8x32xi1>
    %cst_10 = arith.constant 0.000000e+00 : f32
    %36 = vector.broadcast %cst_10 : f32 to vector<8x32xf32>
    %37 = arith.select %35, %0, %36 : vector<8x32xi1>, vector<8x32xf32>
    %38 = arith.truncf %37 : vector<8x32xf32> to vector<8x32xbf16>
    %c7_i32 = arith.constant 7 : i32
    %39 = tpu.dynamic_rotate %0 by %c7_i32 dim 0 : vector<8x32xf32>, i32 -> vector<8x32xf32>
    %c1_i32_11 = arith.constant 1 : i32
    %40 = vector.broadcast %c1_i32_11 : i32 to vector<8x32xi32>
    %41 = arith.addi %17, %40 : vector<8x32xi32>
    %c0_i32_12 = arith.constant 0 : i32
    %42 = vector.broadcast %c0_i32_12 : i32 to vector<8x32xi32>
    %43 = arith.cmpi sge, %41, %42 : vector<8x32xi32>
    %c8_i32_13 = arith.constant 8 : i32
    %44 = vector.broadcast %c8_i32_13 : i32 to vector<8x32xi32>
    %45 = arith.cmpi slt, %41, %44 : vector<8x32xi32>
    %46 = arith.andi %43, %45 : vector<8x32xi1>
    %cst_14 = arith.constant 0.000000e+00 : f32
    %47 = vector.broadcast %cst_14 : f32 to vector<8x32xf32>
    %48 = arith.select %46, %39, %47 : vector<8x32xi1>, vector<8x32xf32>
    %49 = arith.truncf %48 : vector<8x32xf32> to vector<8x32xbf16>
    %50 = tpu.concatenate %28, %38, %49 in 1 : vector<8x32xbf16>, vector<8x32xbf16>, vector<8x32xbf16> -> vector<8x96xbf16>
    %c0_15 = arith.constant 0 : index
    %c0_16 = arith.constant 0 : index
    %51 = vector.load %arg2[%c0_15, %c0_16] : memref<96x64xbf16, #tpu.memory_space<vmem>>, vector<96x64xbf16>
    %cst_17 = arith.constant dense<0.000000e+00> : vector<8x64xf32>
    %52 = tpu.matmul %50, %51, %cst_17 {dimension_numbers = #tpu.dot_dimension_numbers<[1], [0], [0], [1], [0, 0, 1, 1], [], []>} : vector<8x96xbf16>, vector<96x64xbf16>, vector<8x64xf32> -> vector<8x64xf32>
    %53 = vector.extract_strided_slice %52 {offsets = [0, 0], sizes = [8, 32], strides = [1, 1]} : vector<8x64xf32> to vector<8x32xf32>
    %54 = vector.extract_strided_slice %52 {offsets = [0, 32], sizes = [8, 32], strides = [1, 1]} : vector<8x64xf32> to vector<8x32xf32>
    %55 = arith.negf %53 : vector<8x32xf32>
    %56 = math.exp %55 : vector<8x32xf32>
    %cst_18 = arith.constant 1.000000e+00 : f32
    %57 = vector.broadcast %cst_18 : f32 to vector<8x32xf32>
    %58 = arith.addf %57, %56 : vector<8x32xf32>
    %59 = arith.divf %57, %58 : vector<8x32xf32>
    %60 = arith.mulf %54, %59 : vector<8x32xf32>
    %c0_19 = arith.constant 0 : index
    %c0_20 = arith.constant 0 : index
    %61 = vector.load %arg3[%c0_19, %c0_20] : memref<8x32xf32, #tpu.memory_space<vmem>>, vector<8x32xf32>
    tpu.vector_store %arg3[%c0_19, %c0_20], %60 {strides = array<i32>} : memref<8x32xf32, #tpu.memory_space<vmem>>, vector<8x32xf32>,
    return
  }
  func.func @transform_0(%arg0: i32) -> (i32, i32) {
    %c0_i32 = arith.constant 0 : i32
    %c0_i32_0 = arith.constant 0 : i32
    return %arg0, %c0_i32 : i32, i32
  }
  func.func @transform_1(%arg0: i32) -> (i32, i32) {
    %c0_i32 = arith.constant 0 : i32
    %c0_i32_0 = arith.constant 0 : i32
    %c0_i32_1 = arith.constant 0 : i32
    return %c0_i32, %c0_i32_0 : i32, i32
  }
  func.func @transform_2(%arg0: i32) -> (i32, i32) {
    %c0_i32 = arith.constant 0 : i32
    %c0_i32_0 = arith.constant 0 : i32
    return %arg0, %c0_i32 : i32, i32
  }
}

</mosaic_0001>

<bundles_post_ra>
// kernel: tpu_custom_call.1
= control target key start
LH: loop header
LB: loop body
LE: loop exit
PB: predicated region body
PF: predicated region fallthrough
CT: control target
= control target key end

     0   :  { %7 = vsyncpa [#allocation3], 0  ;;  %s669_s0 = inlined_call_operand.vmem [shape: f32[16,32], index: 0, kind: input, shape index: {}]   ;;  %s670_s1 = inlined_call_operand.vmem [shape: bf16[96,64], index: 1, kind: input, shape index: {}]   ;;  %s671_s2 = inlined_call_operand.hbm [shape: f32[16,32], index: 2, kind: output, shape index: {}]  }
   0x1   :  { %9 = vsyncpa [#allocation3 + $0x1], 0  ;;  %s547_s9 = smov 0   ;;  %s549_s10 = smov 0  }
   0x2   :  { %s551_s11 = smov 0   ;;  %s553_s12 = smov 0  }
   0x3 LB: > { %s568_s13 = sadd.s32 4294967295, %s524_s12   ;;  %s367_s14 = sadd.s32 4294967294, %s524_s12   ;;  %s524_s12 = sphi %s553_s12, %s677_s12   ;;  %s520_s11 = sphi %s551_s11, %s676_s11   ;;  %s516_s10 = sphi %s549_s10, %s675_s10   ;;  %s512_s9 = sphi %s547_s9, %s674_s9  }
   0x4   : > { %s572_s15 = sadd.s32 1, %s524_s12   ;;  %s69_s16 = sadd.s32 1, %s520_s11 }
   0x5   : > { %s66_s17 = ssub.s32 %s524_s12, %s572_s15  ;;  %p79_p0 = scmp.ne.s32.totalorder %s520_s11, %s516_s10 }
   0x6   : > { %p67_p1 = scmp.eq.s32.totalorder %s66_s17, 0  ;;  %p80_p2 = scmp.eq.s32.totalorder %s568_s13, 1 }
   0x7   : > { %p85_p3 = scmp.ne.s32.totalorder %s516_s10, %s512_s9  ;;  %p86_p4 = scmp.eq.s32.totalorder %s367_s14, 1 }
   0x8   : > { %s583_s18 = scalar_select %p67_p1, %s520_s11, %s69_s16  }
   0x9   : > { %p585_p5 = por %p80_p2, %p79_p0  ;;  %p589_p6 = por %p86_p4, %p85_p3 }
   0xa   : > { %p370_p7 = scmp.ge.s32.totalorder %s524_s12, 1  ;;  %p114_p8 = scmp.lt.s32.totalorder %s524_s12, 3 }
   0xc   : > { %p115_p9 = pnand %p370_p7, %p114_p8 }
   0xd   : > { %p135_p10 = scmp.lt.s32.totalorder (!%p115_p9), %s568_s13, 1  ;;  %v141_v0 = vlaneseq (!%p115_p9)  ;;  %v452_v1 = vld [vmem:[%s670_s1] sm:$0xff] (!%p115_p9)   ;;  %v526_v2 = vmov (!%p115_p9), 0.0   ;;  %v453_v3 = vld [vmem:[%s670_s1 + $0x8] sm:$0xff] (!%p115_p9)   ;;  %v454_v8 = vld [vmem:[%s670_s1 + $0x10] sm:$0xff] (!%p115_p9)   ;;  %s527_s4 = smov (!%p115_p9), 32  }
   0xe   : > { %118 = sbr.rel (%p115_p9) target bundleno = 632 (0x278), region = 28  ;;  %392 = vmatprep.subr.bf16.mxu0 (!%p115_p9), %v526_v2  ;;  %vm528_vm2 = vmmov (!%p115_p9), 0   ;;  %v455_v16 = vld [vmem:[%s670_s1 + $0x18] sm:$0xff] (!%p115_p9)   ;;  %s529_s7 = smov (!%p115_p9), 64   ;;  %v456_v17 = vld [vmem:[%s670_s1 + $0x20] sm:$0xff] (!%p115_p9)   ;;  %v457_v18 = vld [vmem:[%s670_s1 + $0x28] sm:$0xff] (!%p115_p9)  }
   0xf   : > { %v142_v4 = vshrl.u32 (!%p115_p9), %v141_v0, 7  ;;  %393 = vmatpush3.bf16.msra.mxu0 (!%p115_p9), %v452_v1  ;;  %404 = vmatprep.mubr.msk.bf16.mxu0 (!%p115_p9), %vm528_vm2, %v526_v2  ;;  %vm180_vm3 = vcmask (!%p115_p9), 261120   ;;  %vm184_vm4 = vcmask (!%p115_p9), 523264   ;;  %vm235_vm5 = vcmask (!%p115_p9), 785408   ;;  %s530_s21 = smov (!%p115_p9), 96   ;;  %s132_s22 = sand.u32 (!%p115_p9), 1, %s516_s10  }
  0x10   : > { %394 = vmatprep.subr.bf16.mxu0 (!%p115_p9), %v526_v2  ;;  %s371_s23 = sshll.u32 (!%p115_p9), %s132_s22, 3  ;;  %s382_s24 = sshll.u32 (!%p115_p9), %s568_s13, 7 }
  0x11   : > { %v147_v5 = vand.u32 (!%p115_p9), 7, %v142_v4  ;;  %s295_s30 = scalar_lea.sflag (!%p115_p9), [#allocation3], %s132_s22 }
  0x13   : > { %v168_v7 = vadd.s32 (!%p115_p9), 1, %v147_v5  ;;  %395 = vmatpush3.bf16.msra.mxu0 (!%p115_p9), %v453_v3  ;;  %v156_v9 = vadd.s32 (!%p115_p9), 4294967295, %v147_v5 }
  0x14   : > { %396 = vmatprep.subr.bf16.mxu0 (!%p115_p9), %v526_v2 }
  0x15   : > { %s136_s25 = scalar_select %p135_p10, %s568_s13, 1  ;;  %vm170_vm0 = vcmp.lt.s32.totalorder %v168_v7, 8  ;;  %vm157_vm1 = vcmp.ge.s32.totalorder %v156_v9, 0 }
  0x16   : > { %s531_s13 = smov [#allocation2]  }
  0x17   : > { %s372_s26 = sshll.u32 %s136_s25, 3  ;;  %397 = vmatpush3.bf16.msra.mxu0 %v454_v8  ;;  %s134_s25 = scalar_lea.vmem [#allocation2], %s371_s23 }
  0x18   : > { %s138_s29 = scalar_lea.vmem %s669_s0, %s372_s26  ;;  %398 = vmatprep.subr.bf16.mxu0 %v526_v2  ;;  %s308_s26 = sshll.u32 %s134_s25, 4  ;;  %s628_s26 = int_to_ptr.vmem [resolvable:$true] %s308_s26 }
  0x19   : > { %v140_v6 = vld [vmem:[%s138_s29] sm:$0xff]  ;;  %s626_s29 = scalar_lea.hbm %s671_s2, %s382_s24  ;;  %s462_s3 = scalar_lea.vmem %s628_s26, 128 }
  0x1a   : > { %v166_v10 = vpack.c.bf16 %v140_v6, %v140_v6  ;;  %v167_v11 = vrot.slane %v140_v6, 1  ;;  %v155_v12 = vrot.slane %v140_v6, 7  ;;  %p463_p11 = scmp.ne.s32.totalorder %s628_s26, %s462_s3 }
  0x1b   : > { %399 = vmatpush3.bf16.msra.mxu0 %v455_v16 }
  0x1c   : > { %175 = vrot.lane.b32.xlu0 %v166_v10, %s527_s4  ;;  %v172_v13 = vsel %vm170_vm0, %v167_v11, 0.0  ;;  %v160_v14 = vsel %vm157_vm1, %v155_v12, 0.0  ;;  %400 = vmatprep.subr.bf16.mxu0 %v526_v2  ;;  %p464_p12 = pnand %p463_p11, %p585_p5 }
  0x1d   : > { %v173_v15 = vpack.c.bf16 %v172_v13, %v172_v13  ;;  %v161_v20 = vpack.c.bf16 %v160_v14, %v160_v14 }
  0x1e   : > { %p465_p13 = pneg %p464_p12 }
  0x1f   : > { %401 = vmatpush3.bf16.msra.mxu0 %v456_v17 }
  0x20   : > { %178 = vrot.lane.b32.xlu0 %v173_v15, %s529_s7  ;;  %402 = vmatprep.subr.bf16.mxu0 %v526_v2 }
  0x23   : > { %403 = vmatpush3.bf16.msra.mxu0 %v457_v18 }
  0x8e   : > { %v176_v19 = vpop.permute.xlu0 %175 }
  0x8f   : > { %v183_v21 = vsel %vm180_vm3, %v161_v20, %v176_v19 }
  0x92   : > { %v179_v22 = vpop.permute.xlu0 %178 }
  0x93   : > { %v186_v23 = vsel %vm184_vm4, %v183_v21, %v179_v22 }
  0x94   : > { %405 = vmatmul.mubr.msk.bf16.vlgmr.msra.gmra.mrb[0].mxu0 %vm235_vm5, %v186_v23 }
 0x167   : > { %v272_v24 = vpop.f32.mrb[0].mxu0 }
 0x168   : > { %v380_v25 = vmul.f32 -1.442695, %v272_v24  ;;  %v406_v26 = vpop.f32.mrb[1].mxu0 }
 0x169   : > { %v275_v27 = vpop.f32.mrb[2].mxu0 }
 0x16a   : > { %458 = vpow2.f32 %v380_v25  ;;  %v407_v28 = vpop.f32.mrb[3].mxu0 }
 0x174   : > { %v459_v29 = vpop.eup %458 }
 0x175   : > { %v281_v30 = vadd.f32 1.0, %v459_v29 }
 0x177   : > { %460 = vrcp.f32 %v281_v30 }
 0x181   : > { %v461_v31 = vpop.eup %460 }
 0x182   : > { %285 = vrot.lane.b32.xlu1 %v461_v31, %s527_s4  ;;  %s466_s4 = sshll.u32 %s531_s13, 4  ;;  %s467_s4 = int_to_ptr.vmem [resolvable:$false] %s466_s4 }
 0x183   : > { %s468_s5 = scalar_lea.vmem %s467_s4, 256  ;;  %p469_p0 = scmp.lt.s32.totalorder %s628_s26, %s467_s4 }
 0x184   : > { %p470_p1 = scmp.lt.s32.totalorder %s468_s5, %s462_s3 }
 0x186   : > { %p471_p2 = por %p470_p1, %p469_p0 }
 0x188   : > { %p472_p3 = pnand %p471_p2, %p465_p13 }
 0x1f4   : > { %v286_v32 = vpop.permute.xlu1 %285 }
 0x1f5   : > { %v288_v33 = vmul.f32 %v286_v32, %v272_v24 }
 0x1f7   : > { %290 = vrot.lane.b32.xlu1 %v288_v33, %s530_s21 }
 0x269   : > { %v291_v34 = vpop.permute.xlu1 %290 }
 0x26a   : > { %293 = vst.msk [vmem:[%s134_s25] sm:$0xff] %vm180_vm3, %v291_v34 }
 0x26b   : > { %475 = shalt.err (!%p472_p3)
}
 0x26c   : > { %s476_s6 = scalar_lea.hbm %s626_s29, 128  ;;  %s480_s14 = scalar_lea.hbm %s671_s2, 256 }
 0x26d   : > { %p477_p4 = scmp.ne.s32.totalorder %s626_s29, %s476_s6  ;;  %p481_p9 = scmp.lt.u32.totalorder %s626_s29, %s671_s2 }
 0x26e   : > { %p482_p10 = scmp.lt.u32.totalorder %s480_s14, %s476_s6  ;;  %p484_p12 = scmp.lt.u32.totalorder %s476_s6, %s626_s29 }
 0x26f   : > { %p478_p7 = pnand %p477_p4, %p585_p5 }
 0x270   : > { %p483_p11 = por %p482_p10, %p481_p9 }
 0x271   : > { %p479_p8 = pneg %p478_p7 }
 0x272   : > { %p485_p13 = por %p484_p12, %p483_p11 }
 0x274   : > { %p486_p0 = pnand %p485_p13, %p479_p8 }
 0x276   : > { %489 = shalt.err (!%p486_p0)
}
 0x277   : > { %408 = dma.vmem_to_hbm [thread:$0]  (%p585_p5), %s628_s26, 128, %s626_s29, %s295_s30  }
 0x278 PF: > { %p414_p1 = scmp.ge.s32.totalorder %s524_s12, 2  ;;  %s320_s21 = sand.u32 1, %s512_s9  }
 0x279   : > { %s321_s22 = scalar_lea.sflag [#allocation3], %s320_s21 }
 0x27a   : > { %p411_p2 = pnand %p414_p1, %p589_p6 }
 0x27c   : > { %507 = dma.done.wait (!%p411_p2), %s321_s22, 128  }
 0x27d   : > { %509 = vsyncadd (!%p411_p2), %s321_s22, 4294967168  ;;  %p12_p3 = scmp.ge.s32.totalorder %s572_s15, 4   ;;  %s674_s9 = smov %s516_s10 }
 0x27e   : > { %s675_s10 = smov %s520_s11  ;;  %s676_s11 = smov %s583_s18 }
 0x27f   : > { %s677_s12 = smov %s572_s15  ;;  %14 = sbr.rel (!%p12_p3) target bundleno = 3 (0x3), region = 63 }
 0x286   :  { %326 = vsyncpa [#allocation3], 1 }
 0x287   :  { %328 = vsyncpa [#allocation3 + $0x1], 1 }

</bundles_post_ra>
